<compile_context>
chip_gen: v5e
topology: v5e:2x2
jax: 0.10.0
libtpu: 0.0.40
codegen_flags: <defaults>
</compile_context>

<pallas_src>
import functools

import jax
import jax.numpy as jnp
from jax.experimental import pallas as pl
from jax.experimental.pallas import tpu as pltpu


def net_kernel(x_ref, w_ref, d_ref, filt_ref, b_ref, o_ref,
               xw_ref, acc_ref, h_ref, *, num_classes):
    """Fused Net.forward.

    Grid = (layer, j):
      layer in {0, 1}  : GConv1 (+relu) then GConv2 (+log_softmax)   [arbitrary]
      j in [0, M)      : framelet operator index (reduction)          [arbitrary]

    Refs (per grid step):
      x_ref    [N, Fp]      bf16   node features, zero-padded to Fp lanes
      w_ref    [1, Fp, Fp]  bf16   this layer's weight (zero-padded)
      d_ref    [N, N]       bf16   framelet operator d_{Lev-1+j}
      filt_ref [1, N, 1]    f32    this layer's filter rows for operator j
      b_ref    [1, 1, Fp]   f32    this layer's bias (zero-padded)
      o_ref    [N, Fp]      f32    final log_softmax output (padded lanes = -inf)
    Scratch:
      xw_ref   [N, Fp] bf16  (input @ W), computed once per layer
      acc_ref  [N, Fp] f32   running sum over operators
      h_ref    [N, Fp] f32   relu(GConv1 output), layer-0 -> layer-1 carry
    """
    layer = pl.program_id(0)
    j = pl.program_id(1)

    # ---- start of a layer: reset accumulator, compute xw = input @ W once ----
    @pl.when(j == 0)
    def _start():
        acc_ref[...] = jnp.zeros_like(acc_ref)

        @pl.when(layer == 0)
        def _():
            xw_ref[...] = jnp.dot(
                x_ref[...], w_ref[0],
                preferred_element_type=jnp.float32).astype(jnp.bfloat16)

        @pl.when(layer == 1)
        def _():
            xw_ref[...] = jnp.dot(
                h_ref[...].astype(jnp.bfloat16), w_ref[0],
                preferred_element_type=jnp.float32).astype(jnp.bfloat16)

    # ---- per framelet operator j:  acc += d_j @ (f_j * (d_j @ xw)) ----------
    d = d_ref[...]                                                     # bf16 [N, N]
    h = jnp.dot(d, xw_ref[...], preferred_element_type=jnp.float32)    # f32  [N, Fp]
    h = filt_ref[0] * h                                                # f32 VPU (lane bcast)
    acc_ref[...] += jnp.dot(d, h.astype(jnp.bfloat16),
                            preferred_element_type=jnp.float32)

    # ---- end of a layer: bias + activation ----------------------------------
    @pl.when(j == pl.num_programs(1) - 1)
    def _finish():
        out = acc_ref[...] + b_ref[0]

        @pl.when(layer == 0)
        def _():
            # relu; nn.Dropout in eval mode is identity.
            h_ref[...] = jnp.maximum(out, 0.0)

        @pl.when(layer == 1)
        def _():
            # log_softmax over the real classes only; padded lanes masked to -inf.
            lane = jax.lax.broadcasted_iota(jnp.int32, out.shape, 1)
            masked = jnp.where(lane < num_classes, out, -jnp.inf)
            m = jnp.max(masked, axis=1, keepdims=True)
            s = masked - m
            lse = jnp.log(jnp.sum(jnp.exp(s), axis=1, keepdims=True))
            o_ref[...] = s - lse


def _pad2(a, rows, cols):
    out = jnp.zeros((rows, cols), jnp.float32)
    return out.at[:a.shape[0], :a.shape[1]].set(a)


def net_forward(x, d_list, params, *, Lev, num_nodes, num_classes):
    """Net.forward: GConv1 -> relu -> dropout(eval) -> GConv2 -> log_softmax."""
    n = num_nodes
    crop = (Lev - 1) * n
    fin = x.shape[1]
    nhid = params["w1"].shape[1]

    # Lane-dense padded feature width (multiple of 128).
    fp = ((max(fin, nhid, num_classes) + 127) // 128) * 128

    # Only the operators that survive the crop: d_list[Lev-1:], row-stacked once.
    d_tail = jnp.concatenate(d_list[Lev - 1:], axis=0).astype(jnp.bfloat16)  # [M*N, N]
    n_ops = d_tail.shape[0] // n

    w_stack = jnp.stack([_pad2(params["w1"], fp, fp),
                         _pad2(params["w2"], fp, fp)], axis=0).astype(jnp.bfloat16)
    b_stack = jnp.stack([_pad2(params["b1"][None, :], 1, fp),
                         _pad2(params["b2"][None, :], 1, fp)], axis=0)        # f32 [2,1,Fp]
    filt_stack = jnp.stack([params["filt1"][crop:],
                            params["filt2"][crop:]], axis=0)                  # f32 [2,M*N,1]
    x_pad = _pad2(x, n, fp).astype(jnp.bfloat16)                              # [N, Fp]

    kernel = functools.partial(net_kernel, num_classes=num_classes)

    out = pl.pallas_call(
        kernel,
        out_shape=jax.ShapeDtypeStruct((n, fp), jnp.float32),
        grid_spec=pltpu.PrefetchScalarGridSpec(
            num_scalar_prefetch=0,
            grid=(2, n_ops),
            in_specs=[
                pl.BlockSpec((n, fp), lambda l, j: (0, 0)),        # x
                pl.BlockSpec((1, fp, fp), lambda l, j: (l, 0, 0)),  # W  (per layer)
                pl.BlockSpec((n, n), lambda l, j: (j, 0)),          # d_j
                pl.BlockSpec((1, n, 1), lambda l, j: (l, j, 0)),    # filter rows for (l, j)
                pl.BlockSpec((1, 1, fp), lambda l, j: (l, 0, 0)),   # bias (per layer)
            ],
            out_specs=pl.BlockSpec((n, fp), lambda l, j: (0, 0)),
            scratch_shapes=[
                pltpu.VMEM((n, fp), jnp.bfloat16),   # xw
                pltpu.VMEM((n, fp), jnp.float32),    # accumulator
                pltpu.VMEM((n, fp), jnp.float32),    # relu(GConv1) carry
            ],
        ),
        compiler_params=pltpu.CompilerParams(
            # Both axes are sequential: layer has a data dependency, j is a reduction.
            # (At realistic N one would add a parallel row-tile axis for megacore.)
            dimension_semantics=("arbitrary", "arbitrary")),
    )(x_pad, w_stack, d_tail, filt_stack, b_stack)

    return out[:, :num_classes]


def reference_forward(x, d_list, params, *, Lev, num_nodes):
    """Pure-JAX f32 reference mirroring the PyTorch code exactly."""
    crop = (Lev - 1) * num_nodes
    d_rows = jnp.concatenate(d_list, axis=0)
    d_cols = jnp.concatenate(d_list[Lev - 1:], axis=1)

    def layer(h, w, filt, b):
        hw = h @ w
        t = d_rows @ hw
        t = filt * t
        return d_cols @ t[crop:, :] + b

    h = jax.nn.relu(layer(x, params["w1"], params["filt1"], params["b1"]))
    out = layer(h, params["w2"], params["filt2"], params["b2"])
    return jax.nn.log_softmax(out, axis=1)


def xavier_uniform(key, shape):
    fan_in, fan_out = shape
    bound = (6.0 / (fan_in + fan_out)) ** 0.5
    return jax.random.uniform(key, shape, jnp.float32, -bound, bound)


if __name__ == "__main__":
    # Small, self-consistent shapes.
    num_nodes = 16
    num_features = 8
    nhid = 32
    num_classes = 4
    r = 2
    Lev = 2
    RL = r * Lev  # number of framelet operators in d_list

    key = jax.random.PRNGKey(0)
    keys = jax.random.split(key, 1 + RL + 4)

    # Node features.
    x = jax.random.normal(keys[0], (num_nodes, num_features), jnp.float32)

    # Dense stand-ins for the sparse framelet matrices d_list.
    d_list = [
        0.1 * jax.random.normal(keys[1 + i], (num_nodes, num_nodes), jnp.float32)
        for i in range(RL)
    ]

    # Deterministic parameter init (mirrors reset_parameters()).
    params = {
        "w1": xavier_uniform(keys[1 + RL], (num_features, nhid)),
        "filt1": jax.random.uniform(keys[2 + RL], (RL * num_nodes, 1),
                                    jnp.float32, 0.9, 1.1),
        "b1": jnp.zeros((nhid,), jnp.float32),
        "w2": xavier_uniform(keys[3 + RL], (nhid, num_classes)),
        "filt2": jax.random.uniform(keys[4 + RL], (RL * num_nodes, 1),
                                    jnp.float32, 0.9, 1.1),
        "b2": jnp.zeros((num_classes,), jnp.float32),
    }

    out = net_forward(x, d_list, params,
                      Lev=Lev, num_nodes=num_nodes, num_classes=num_classes)
    out = jax.block_until_ready(out)

    assert out.shape == (num_nodes, num_classes)
    # log_softmax rows should sum to ~1 after exp.
    row_sums = jnp.exp(out).sum(axis=1)
    assert bool(jnp.all(jnp.abs(row_sums - 1.0) < 1e-3))
    # Match the pure-JAX f32 reference (loose tolerance: bf16 MXU operands).
    ref = reference_forward(x, d_list, params, Lev=Lev, num_nodes=num_nodes)
    assert bool(jnp.max(jnp.abs(out - ref)) < 5e-2)

    print("KERNEL_OK")
</pallas_src>

<mosaic_0001>
module attributes {stable_mosaic.version = 11 : i64} {
  func.func @net_kernel(%arg0: i32, %arg1: i32, %arg2: memref<16x128xbf16, #tpu.memory_space<vmem>>, %arg3: memref<1x128x128xbf16, #tpu.memory_space<vmem>>, %arg4: memref<16x16xbf16, #tpu.memory_space<vmem>>, %arg5: memref<1x16x1xf32, #tpu.memory_space<vmem>>, %arg6: memref<1x1x128xf32, #tpu.memory_space<vmem>>, %arg7: memref<16x128xf32, #tpu.memory_space<vmem>>, %arg8: memref<16x128xbf16, #tpu.memory_space<vmem>>, %arg9: memref<16x128xf32, #tpu.memory_space<vmem>>, %arg10: memref<16x128xf32, #tpu.memory_space<vmem>>) attributes {dimension_semantics = [#tpu.dimension_semantics<arbitrary>, #tpu.dimension_semantics<arbitrary>], iteration_bounds = array<i64: 2, 3>, scalar_prefetch = 0 : i64, scratch_operands = 3 : i64, tpu.core_type = #tpu.core_type<tc>, window_params = [{pipeline_mode = #tpu.pipeline_mode<synchronous>, transform_indices = @transform_0, window_bounds = array<i64: 16, 128>}, {transform_indices = @transform_1, window_bounds = array<i64: 1, 128, 128>}, {transform_indices = @transform_2, window_bounds = array<i64: 16, 16>}, {transform_indices = @transform_3, window_bounds = array<i64: 1, 16, 1>}, {transform_indices = @transform_4, window_bounds = array<i64: 1, 1, 128>}, {pipeline_mode = #tpu.pipeline_mode<synchronous>, transform_indices = @transform_5, window_bounds = array<i64: 16, 128>}]} {
    %c0_i32 = arith.constant 0 : i32
    %0 = arith.cmpi eq, %arg1, %c0_i32 : i32
    %1 = arith.extui %0 : i1 to i32
    %c0_i32_0 = arith.constant 0 : i32
    %2 = arith.cmpi ne, %1, %c0_i32_0 : i32
    scf.if %2 {
      %cst_13 = arith.constant 0.000000e+00 : f32
      %18 = vector.broadcast %cst_13 : f32 to vector<16x128xf32>
      %c0_14 = arith.constant 0 : index
      %c0_15 = arith.constant 0 : index
      %19 = vector.load %arg9[%c0_14, %c0_15] : memref<16x128xf32, #tpu.memory_space<vmem>>, vector<16x128xf32>
      tpu.vector_store %arg9[%c0_14, %c0_15], %18 {strides = array<i32>} : memref<16x128xf32, #tpu.memory_space<vmem>>, vector<16x128xf32>,
      %c0_i32_16 = arith.constant 0 : i32
      %20 = arith.cmpi eq, %arg0, %c0_i32_16 : i32
      %21 = arith.extui %20 : i1 to i32
      %c0_i32_17 = arith.constant 0 : i32
      %22 = arith.cmpi ne, %21, %c0_i32_17 : i32
      scf.if %22 {
        %c0_19 = arith.constant 0 : index
        %c0_20 = arith.constant 0 : index
        %26 = vector.load %arg2[%c0_19, %c0_20] : memref<16x128xbf16, #tpu.memory_space<vmem>>, vector<16x128xbf16>
        %c0_21 = arith.constant 0 : index
        %c0_22 = arith.constant 0 : index
        %c0_23 = arith.constant 0 : index
        %27 = vector.load %arg3[%c0_21, %c0_22, %c0_23] : memref<1x128x128xbf16, #tpu.memory_space<vmem>>, vector<1x128x128xbf16>
        %28 = vector.shape_cast %27 : vector<1x128x128xbf16> to vector<128x128xbf16>
        %cst_24 = arith.constant dense<0.000000e+00> : vector<16x128xf32>
        %29 = tpu.matmul %26, %28, %cst_24 {dimension_numbers = #tpu.dot_dimension_numbers<[1], [0], [0], [1], [0, 0, 1, 1], [], []>} : vector<16x128xbf16>, vector<128x128xbf16>, vector<16x128xf32> -> vector<16x128xf32>
        %30 = arith.truncf %29 : vector<16x128xf32> to vector<16x128xbf16>
        %c0_25 = arith.constant 0 : index
        %c0_26 = arith.constant 0 : index
        %31 = vector.load %arg8[%c0_25, %c0_26] : memref<16x128xbf16, #tpu.memory_space<vmem>>, vector<16x128xbf16>
        tpu.vector_store %arg8[%c0_25, %c0_26], %30 {strides = array<i32>} : memref<16x128xbf16, #tpu.memory_space<vmem>>, vector<16x128xbf16>,
      } else {
      }
      %c1_i32 = arith.constant 1 : i32
      %23 = arith.cmpi eq, %arg0, %c1_i32 : i32
      %24 = arith.extui %23 : i1 to i32
      %c0_i32_18 = arith.constant 0 : i32
      %25 = arith.cmpi ne, %24, %c0_i32_18 : i32
      scf.if %25 {
        %c0_19 = arith.constant 0 : index
        %c0_20 = arith.constant 0 : index
        %26 = vector.load %arg10[%c0_19, %c0_20] : memref<16x128xf32, #tpu.memory_space<vmem>>, vector<16x128xf32>
        %27 = arith.truncf %26 : vector<16x128xf32> to vector<16x128xbf16>
        %c0_21 = arith.constant 0 : index
        %c0_22 = arith.constant 0 : index
        %c0_23 = arith.constant 0 : index
        %28 = vector.load %arg3[%c0_21, %c0_22, %c0_23] : memref<1x128x128xbf16, #tpu.memory_space<vmem>>, vector<1x128x128xbf16>
        %29 = vector.shape_cast %28 : vector<1x128x128xbf16> to vector<128x128xbf16>
        %cst_24 = arith.constant dense<0.000000e+00> : vector<16x128xf32>
        %30 = tpu.matmul %27, %29, %cst_24 {dimension_numbers = #tpu.dot_dimension_numbers<[1], [0], [0], [1], [0, 0, 1, 1], [], []>} : vector<16x128xbf16>, vector<128x128xbf16>, vector<16x128xf32> -> vector<16x128xf32>
        %31 = arith.truncf %30 : vector<16x128xf32> to vector<16x128xbf16>
        %c0_25 = arith.constant 0 : index
        %c0_26 = arith.constant 0 : index
        %32 = vector.load %arg8[%c0_25, %c0_26] : memref<16x128xbf16, #tpu.memory_space<vmem>>, vector<16x128xbf16>
        tpu.vector_store %arg8[%c0_25, %c0_26], %31 {strides = array<i32>} : memref<16x128xbf16, #tpu.memory_space<vmem>>, vector<16x128xbf16>,
      } else {
      }
    } else {
    }
    %c0 = arith.constant 0 : index
    %c0_1 = arith.constant 0 : index
    %3 = vector.load %arg4[%c0, %c0_1] : memref<16x16xbf16, #tpu.memory_space<vmem>>, vector<16x16xbf16>
    %c0_2 = arith.constant 0 : index
    %c0_3 = arith.constant 0 : index
    %4 = vector.load %arg8[%c0_2, %c0_3] : memref<16x128xbf16, #tpu.memory_space<vmem>>, vector<16x128xbf16>
    %cst = arith.constant dense<0.000000e+00> : vector<16x128xf32>
    %5 = tpu.matmul %3, %4, %cst {dimension_numbers = #tpu.dot_dimension_numbers<[1], [0], [0], [1], [0, 0, 1, 1], [], []>} : vector<16x16xbf16>, vector<16x128xbf16>, vector<16x128xf32> -> vector<16x128xf32>
    %c0_4 = arith.constant 0 : index
    %c0_5 = arith.constant 0 : index
    %c0_6 = arith.constant 0 : index
    %6 = vector.load %arg5[%c0_4, %c0_5, %c0_6] : memref<1x16x1xf32, #tpu.memory_space<vmem>>, vector<1x16x1xf32>
    %7 = vector.shape_cast %6 : vector<1x16x1xf32> to vector<16x1xf32>
    %8 = vector.broadcast %7 : vector<16x1xf32> to vector<16x128xf32>
    %9 = arith.mulf %8, %5 : vector<16x128xf32>
    %c0_7 = arith.constant 0 : index
    %c0_8 = arith.constant 0 : index
    %10 = vector.load %arg9[%c0_7, %c0_8] : memref<16x128xf32, #tpu.memory_space<vmem>>, vector<16x128xf32>
    %11 = arith.truncf %9 : vector<16x128xf32> to vector<16x128xbf16>
    %cst_9 = arith.constant dense<0.000000e+00> : vector<16x128xf32>
    %12 = tpu.matmul %3, %11, %cst_9 {dimension_numbers = #tpu.dot_dimension_numbers<[1], [0], [0], [1], [0, 0, 1, 1], [], []>} : vector<16x16xbf16>, vector<16x128xbf16>, vector<16x128xf32> -> vector<16x128xf32>
    %13 = arith.addf %10, %12 : vector<16x128xf32>
    %c0_10 = arith.constant 0 : index
    %c0_11 = arith.constant 0 : index
    %14 = vector.load %arg9[%c0_10, %c0_11] : memref<16x128xf32, #tpu.memory_space<vmem>>, vector<16x128xf32>
    tpu.vector_store %arg9[%c0_10, %c0_11], %13 {strides = array<i32>} : memref<16x128xf32, #tpu.memory_space<vmem>>, vector<16x128xf32>,
    %c2_i32 = arith.constant 2 : i32
    %15 = arith.cmpi eq, %arg1, %c2_i32 : i32
    %16 = arith.extui %15 : i1 to i32
    %c0_i32_12 = arith.constant 0 : i32
    %17 = arith.cmpi ne, %16, %c0_i32_12 : i32
    scf.if %17 {
      %c0_13 = arith.constant 0 : index
      %c0_14 = arith.constant 0 : index
      %18 = vector.load %arg9[%c0_13, %c0_14] : memref<16x128xf32, #tpu.memory_space<vmem>>, vector<16x128xf32>
      %c0_15 = arith.constant 0 : index
      %c0_16 = arith.constant 0 : index
      %c0_17 = arith.constant 0 : index
      %19 = vector.load %arg6[%c0_15, %c0_16, %c0_17] : memref<1x1x128xf32, #tpu.memory_space<vmem>>, vector<1x1x128xf32>
      %20 = vector.shape_cast %19 : vector<1x1x128xf32> to vector<1x128xf32>
      %21 = vector.broadcast %20 : vector<1x128xf32> to vector<16x128xf32>
      %22 = arith.addf %18, %21 : vector<16x128xf32>
      %c0_i32_18 = arith.constant 0 : i32
      %23 = arith.cmpi eq, %arg0, %c0_i32_18 : i32
      %24 = arith.extui %23 : i1 to i32
      %c0_i32_19 = arith.constant 0 : i32
      %25 = arith.cmpi ne, %24, %c0_i32_19 : i32
      scf.if %25 {
        %cst_21 = arith.constant 0.000000e+00 : f32
        %29 = vector.broadcast %cst_21 : f32 to vector<16x128xf32>
        %30 = arith.maximumf %22, %29 : vector<16x128xf32>
        %c0_22 = arith.constant 0 : index
        %c0_23 = arith.constant 0 : index
        %31 = vector.load %arg10[%c0_22, %c0_23] : memref<16x128xf32, #tpu.memory_space<vmem>>, vector<16x128xf32>
        tpu.vector_store %arg10[%c0_22, %c0_23], %30 {strides = array<i32>} : memref<16x128xf32, #tpu.memory_space<vmem>>, vector<16x128xf32>,
      } else {
      }
      %c1_i32 = arith.constant 1 : i32
      %26 = arith.cmpi eq, %arg0, %c1_i32 : i32
      %27 = arith.extui %26 : i1 to i32
      %c0_i32_20 = arith.constant 0 : i32
      %28 = arith.cmpi ne, %27, %c0_i32_20 : i32
      scf.if %28 {
        %29 = tpu.iota {dimensions = array<i32: 1>} : vector<16x128xi32>
        %c4_i32 = arith.constant 4 : i32
        %30 = vector.broadcast %c4_i32 : i32 to vector<16x128xi32>
        %31 = arith.cmpi slt, %29, %30 : vector<16x128xi32>
        %cst_21 = arith.constant 0xFF800000 : f32
        %32 = vector.broadcast %cst_21 : f32 to vector<16x128xf32>
        %33 = arith.select %31, %22, %32 : vector<16x128xi1>, vector<16x128xf32>
        %cst_22 = arith.constant dense<0xFF800000> : vector<16xf32>
        %34 = vector.multi_reduction <maximumf>, %33, %cst_22 [1] : vector<16x128xf32> to vector<16xf32>
        %35 = vector.shape_cast %34 : vector<16xf32> to vector<16x1xf32>
        %36 = vector.broadcast %35 : vector<16x1xf32> to vector<16x128xf32>
        %37 = arith.subf %33, %36 : vector<16x128xf32>
        %38 = math.exp %37 : vector<16x128xf32>
        %cst_23 = arith.constant dense<0.000000e+00> : vector<16xf32>
        %39 = vector.multi_reduction <add>, %38, %cst_23 [1] : vector<16x128xf32> to vector<16xf32>
        %40 = vector.shape_cast %39 : vector<16xf32> to vector<16x1xf32>
        %41 = math.log %40 : vector<16x1xf32>
        %42 = vector.broadcast %41 : vector<16x1xf32> to vector<16x128xf32>
        %43 = arith.subf %37, %42 : vector<16x128xf32>
        %c0_24 = arith.constant 0 : index
        %c0_25 = arith.constant 0 : index
        %44 = vector.load %arg7[%c0_24, %c0_25] : memref<16x128xf32, #tpu.memory_space<vmem>>, vector<16x128xf32>
        tpu.vector_store %arg7[%c0_24, %c0_25], %43 {strides = array<i32>} : memref<16x128xf32, #tpu.memory_space<vmem>>, vector<16x128xf32>,
      } else {
      }
    } else {
    }
    return
  }
  func.func @transform_0(%arg0: i32, %arg1: i32) -> (i32, i32) {
    %c0_i32 = arith.constant 0 : i32
    %c0_i32_0 = arith.constant 0 : i32
    %c0_i32_1 = arith.constant 0 : i32
    return %c0_i32, %c0_i32_0 : i32, i32
  }
  func.func @transform_1(%arg0: i32, %arg1: i32) -> (i32, i32, i32) {
    %c0_i32 = arith.constant 0 : i32
    %c0_i32_0 = arith.constant 0 : i32
    %c0_i32_1 = arith.constant 0 : i32
    return %arg0, %c0_i32, %c0_i32_0 : i32, i32, i32
  }
  func.func @transform_2(%arg0: i32, %arg1: i32) -> (i32, i32) {
    %c0_i32 = arith.constant 0 : i32
    %c0_i32_0 = arith.constant 0 : i32
    return %arg1, %c0_i32 : i32, i32
  }
  func.func @transform_3(%arg0: i32, %arg1: i32) -> (i32, i32, i32) {
    %c0_i32 = arith.constant 0 : i32
    %c0_i32_0 = arith.constant 0 : i32
    return %arg0, %arg1, %c0_i32 : i32, i32, i32
  }
  func.func @transform_4(%arg0: i32, %arg1: i32) -> (i32, i32, i32) {
    %c0_i32 = arith.constant 0 : i32
    %c0_i32_0 = arith.constant 0 : i32
    %c0_i32_1 = arith.constant 0 : i32
    return %arg0, %c0_i32, %c0_i32_0 : i32, i32, i32
  }
  func.func @transform_5(%arg0: i32, %arg1: i32) -> (i32, i32) {
    %c0_i32 = arith.constant 0 : i32
    %c0_i32_0 = arith.constant 0 : i32
    %c0_i32_1 = arith.constant 0 : i32
    return %c0_i32, %c0_i32_0 : i32, i32
  }
}

</mosaic_0001>

<bundles_post_ra>
// kernel: tpu_custom_call.1
= control target key start
LH: loop header
LB: loop body
LE: loop exit
PB: predicated region body
PF: predicated region fallthrough
CT: control target
= control target key end

     0   :  { %s1217_s0 = inlined_call_operand.hbm [shape: bf16[16,128], index: 0, kind: input, shape index: {}]   ;;  %s1218_s1 = inlined_call_operand.vmem [shape: bf16[2,128,128], index: 1, kind: input, shape index: {}]   ;;  %s1219_s2 = inlined_call_operand.vmem [shape: bf16[48,16], index: 2, kind: input, shape index: {}]   ;;  %s1220_s3 = inlined_call_operand.vmem [shape: f32[2,48,1], index: 3, kind: input, shape index: {}]   ;;  %s1221_s4 = inlined_call_operand.vmem [shape: f32[2,1,128], index: 4, kind: input, shape index: {}]   ;;  %s1222_s5 = inlined_call_operand.hbm [shape: f32[16,128], index: 5, kind: output, shape index: {}]  }
   0x1   :  { %1224 = sst [smem:[#allocation11_spill]] %s1217_s0 }
   0x2   :  { %10 = vsyncpa [#allocation6], 0 }
   0x3   :  { %11 = vsyncpa [#allocation7], 0  ;;  %s1083_s18 = smov 0   ;;  %s1085_s19 = smov 0  }
   0x4   :  { %s1087_s20 = smov 0   ;;  %s1089_s21 = smov 0  }
   0x5   :  { %s1091_s22 = smov 0  }
   0x6 LB: > { %s1223_s23 = sadd.s32 4294967295, %s1043_s22   ;;  %s26_s24 = sadd.s32 1, %s1035_s20  ;;  %s1043_s22 = sphi %s1091_s22, %s17_s22   ;;  %s1039_s21 = sphi %s1089_s21, %s1232_s21   ;;  %s1035_s20 = sphi %s1087_s20, %s1231_s20   ;;  %s1031_s19 = sphi %s1085_s19, %s1230_s19   ;;  %s1027_s18 = sphi %s1083_s18, %s1229_s18  }
   0x7   : > { %p27_p0 = scmp.ge.s32.totalorder %s26_s24, 3  ;;  %s29_s25 = sadd.s32 1, %s1039_s21 }
   0x8   : > { %p735_p1 = scmp.ge.s32.totalorder %s1043_s22, 1  ;;  %p182_p2 = scmp.lt.s32.totalorder %s1043_s22, 7 }
   0x9   : > { %s1234_s24 = smov (%p27_p0, %s26_s24), 0  ;;  %s1236_s25 = smov (!%p27_p0, %s29_s25), %s1039_s21 }
   0xa   : > { %p1116_p3 = pnand %p735_p1, %p182_p2  ;;  %p31_p4 = scmp.ge.s32.totalorder %s1236_s25, 2 }
   0xb   : > { %p1122_p5 = scmp.eq.s32.totalorder %s1223_s23, 0  ;;  %s1227_s0 = sld [smem:[#allocation11_spill]] }
   0xc   : > { %p873_p6 = pneg %p1116_p3  ;;  %s1238_s25 = smov (%p31_p4, %s1236_s25), 0 }
   0xd   : > { %s1045_s6 = smov [#allocation5]   ;;  %s1046_s8 = smov 64  }
   0xe   : > { %s195_s7 = sshll.u32 %s1045_s6, 4  ;;  %p874_p7 = pnand %p1122_p5, %p873_p6  ;;  %s196_s7 = int_to_ptr.vmem [resolvable:$true] %s195_s7 }
   0xf   : > { %s1047_s9 = smov 4   ;;  %247 = sbr.rel (%p1116_p3) target bundleno = 967 (0x3c7), region = 40 }
  0x11   : > { %s193_s30 = sshll.u32 %s1227_s0, 4  ;;  %s194_s30 = int_to_ptr.hbm [resolvable:$true] %s193_s30 }
  0x12   : > { %876 = dma.hbm_to_vmem [thread:$0]  (!%p874_p7), %s194_s30, 128, %s196_s7, [#allocation6], %s1046_s8, %s1046_s8, %s1047_s9  }
  0x14   : > { %1018 = dma.done.wait (%p1122_p5), [#allocation6], 128  }
  0x15   : > { %1020 = vsyncadd (%p1122_p5), [#allocation6], 4294967168  ;;  %p288_p8 = scmp.lt.s32.totalorder %s1031_s19, 1  ;;  %s742_s10 = sshll.u32 %s1027_s18, 1 }
  0x16   : > { %p294_p9 = scmp.lt.s32.totalorder %s742_s10, 5  ;;  %p746_p10 = scmp.ne.s32.totalorder %s1027_s18, 0 }
  0x17   : > { %s1144_s11 = scalar_select %p288_p8, %s1031_s19, 1 }
  0x18   : > { %s1240_s10 = smov (!%p294_p9, %s742_s10), 5  ;;  %p747_p11 = scmp.ne.s32.totalorder (!%p746_p10), %s1031_s19, 0 }
  0x19   : > { %s834_s12 = sshll.u32 %s1144_s11, 6  ;;  %s864_s13 = smul.u32 6, %s1144_s11 }
  0x1a   : > { %s1151_s16 = scalar_lea.vmem %s1218_s1, %s834_s12  ;;  %s743_s17 = sshll.u32 %s1240_s10, 2 }
  0x1b   : > { %s1156_s28 = scalar_lea.vmem %s1219_s2, %s743_s17  ;;  %s305_s29 = sadd.s32 %s864_s13, %s1240_s10 }
  0x1c   : > { %s745_s30 = sshll.u32 %s305_s29, 3  ;;  %s311_s8 = scalar_lea.vmem %s1221_s4, %s1144_s11 }
  0x1d   : > { %s1165_s0 = scalar_lea.vmem %s1220_s3, %s745_s30  ;;  %316 = sbr.rel (%p746_p10) target bundleno = 384 (0x180), region = 48 }
  0x22   : > { %v1048_v0 = vmov 0.0   ;;  %322 = sbr.rel (%p747_p11) target bundleno = 208 (0xd0), region = 52 }
  0x23   : > { %317 = vst [vmem:[#allocation3] sm:$0xff] %v1048_v0 }
  0x24   : > { %318 = vst [vmem:[#allocation3 + $0x8] sm:$0xff] %v1048_v0 }
  0x27   : > { %v843_v1 = vld [vmem:[%s1151_s16 + $0x38] sm:$0xff]  ;;  %v842_v2 = vld [vmem:[%s1151_s16 + $0x30] sm:$0xff]  ;;  %v841_v3 = vld [vmem:[%s1151_s16 + $0x28] sm:$0xff] }
  0x28   : > { %395 = vmatpush.bf16.msra.mxu0 %v843_v1  ;;  %v840_v4 = vld [vmem:[%s1151_s16 + $0x20] sm:$0xff]  ;;  %v839_v5 = vld [vmem:[%s1151_s16 + $0x18] sm:$0xff]  ;;  %v838_v6 = vld [vmem:[%s1151_s16 + $0x10] sm:$0xff] }
  0x29   : > { %v837_v7 = vld [vmem:[%s1151_s16 + $0x8] sm:$0xff]  ;;  %v836_v8 = vld [vmem:[%s1151_s16] sm:$0xff] }
  0x2a   : > { %v835_v9 = vld [vmem:[#allocation5] sm:$0xff] }
  0x2c   : > { %396 = vmatpush.bf16.msra.mxu0 %v842_v2 }
  0x30   : > { %397 = vmatpush.bf16.msra.mxu0 %v841_v3 }
  0x34   : > { %398 = vmatpush.bf16.msra.mxu0 %v840_v4 }
  0x38   : > { %399 = vmatpush.bf16.msra.mxu0 %v839_v5 }
  0x3c   : > { %400 = vmatpush.bf16.msra.mxu0 %v838_v6 }
  0x40   : > { %401 = vmatpush.bf16.msra.mxu0 %v837_v7 }
  0x44   : > { %402 = vmatpush.bf16.msra.mxu0 %v836_v8 }
  0x47   : > { %403 = vmatmul.bf16.vlgmr.msra.gmra.mxu0 %v835_v9 }
  0xc4   : > { %v404_v10 = vpop.f32.mrf.mxu0 }
  0xcc   : > { %v406_v11 = vpop.f32.mrf.mxu0 }
  0xcd   : > { %v857_v12 = vpack.c.bf16 %v406_v11, %v404_v10 }
  0xcf   : > { %858 = vst [vmem:[#allocation2] sm:$0xff] %v857_v12  }
  0xd0 PF: > { %p784_p12 = scmp.ne.s32.totalorder %s1031_s19, 1 }
  0xd2   : > { %416 = sbr.rel (%p784_p12) target bundleno = 384 (0x180), region = 56 }
  0xd7   : > { %v851_v13 = vld [vmem:[%s1151_s16 + $0x38] sm:$0xff]  ;;  %v850_v14 = vld [vmem:[%s1151_s16 + $0x30] sm:$0xff]  ;;  %v849_v15 = vld [vmem:[%s1151_s16 + $0x28] sm:$0xff] }
  0xd8   : > { %484 = vmatpush.bf16.msra.mxu0 %v851_v13  ;;  %v848_v16 = vld [vmem:[%s1151_s16 + $0x20] sm:$0xff]  ;;  %v847_v17 = vld [vmem:[%s1151_s16 + $0x18] sm:$0xff]  ;;  %v846_v18 = vld [vmem:[%s1151_s16 + $0x10] sm:$0xff] }
  0xd9   : > { %v845_v19 = vld [vmem:[%s1151_s16 + $0x8] sm:$0xff]  ;;  %v844_v20 = vld [vmem:[%s1151_s16] sm:$0xff]  ;;  %v418_v22 = vld [vmem:[#allocation4] sm:$0xff] }
  0xda   : > { %v417_v21 = vld [vmem:[#allocation4 + $0x8] sm:$0xff] }
  0xdb   : > { %v419_v23 = vpack.c.bf16 %v418_v22, %v417_v21 }
  0xdc   : > { %485 = vmatpush.bf16.msra.mxu0 %v850_v14 }
  0xe0   : > { %486 = vmatpush.bf16.msra.mxu0 %v849_v15 }
  0xe4   : > { %487 = vmatpush.bf16.msra.mxu0 %v848_v16 }
  0xe8   : > { %488 = vmatpush.bf16.msra.mxu0 %v847_v17 }
  0xec   : > { %489 = vmatpush.bf16.msra.mxu0 %v846_v18 }
  0xf0   : > { %490 = vmatpush.bf16.msra.mxu0 %v845_v19 }
  0xf4   : > { %491 = vmatpush.bf16.msra.mxu0 %v844_v20 }
  0xf7   : > { %492 = vmatmul.bf16.vlgmr.msra.gmra.mxu0 %v419_v23 }
 0x174   : > { %v493_v24 = vpop.f32.mrf.mxu0 }
 0x17c   : > { %v495_v25 = vpop.f32.mrf.mxu0 }
 0x17d   : > { %v862_v26 = vpack.c.bf16 %v495_v25, %v493_v24 }
 0x17f   : > { %863 = vst [vmem:[#allocation2] sm:$0xff] %v862_v26  }
 0x180 PF: > { %v535_v28 = vld [vmem:[%s1165_s0] sm:$0xff]  ;;  %v1049_v30 = vmov 0   ;;  %vm517_vm0 = vcmask 130048   ;;  %v536_v31 = vld [vmem:[%s1165_s0 + $0x8] sm:$0xff]  ;;  %v550_v42 = vld [vmem:[#allocation3 + $0x8] sm:$0xff]  ;;  %p827_p13 = scmp.ne.s32.totalorder %s1027_s18, 2 }
 0x181   : > { %v852_v29 = vld [vmem:[%s1156_s28] sm:$0xff]  ;;  %929 = vset.pattern.permute.xlu0 %v1049_v30  ;;  %v549_v39 = vld [vmem:[#allocation3] sm:$0xff]  ;;  %p828_p0 = scmp.ne.s32.totalorder (!%p827_p13), %s1031_s19, 0 }
 0x182   : > { %539 = vperm.xlu0 %929, %v535_v28  }
 0x186   : > { %v853_v27 = vld [vmem:[#allocation2] sm:$0xff] }
 0x187   : > { %528 = vmatpush.bf16.msra.mxu0 %v853_v27 }
 0x18a   : > { %825 = vmatmul.msk.bf16.vlgmr.msra.gmra.mxu0 %vm517_vm0, %v852_v29  ;;  %544 = vperm.xlu0 %929, %v536_v31  }
 0x1f4   : > { %v540_v32 = vpop.permute.xlu0 %539 }
 0x1fc   : > { %v545_v34 = vpop.permute.xlu0 %544 }
 0x207   : > { %v530_v33 = vpop.f32.mrf.mxu0 }
 0x208   : > { %v547_v36 = vmul.f32 %v540_v32, %v530_v33 }
 0x20f   : > { %v532_v35 = vpop.f32.mrf.mxu0 }
 0x210   : > { %v548_v37 = vmul.f32 %v545_v34, %v532_v35 }
 0x212   : > { %v551_v38 = vpack.c.bf16 %v548_v37, %v547_v36 }
 0x214   : > { %559 = vmatpush.bf16.msra.mxu1 %v551_v38 }
 0x217   : > { %826 = vmatmul.msk.bf16.vlgmr.msra.gmra.mxu1 %vm517_vm0, %v852_v29 }
 0x294   : > { %v561_v40 = vpop.f32.mrf.mxu1 }
 0x295   : > { %v566_v41 = vadd.f32 %v561_v40, %v549_v39 }
 0x297   : > { %568 = vst [vmem:[#allocation3] sm:$0xff] %v566_v41 }
 0x29b   : > { %573 = sbr.rel (%p827_p13) target bundleno = 960 (0x3c0), region = 60 }
 0x29c   : > { %v563_v43 = vpop.f32.mrf.mxu1 }
 0x29d   : > { %v567_v44 = vadd.f32 %v563_v43, %v550_v42 }
 0x29f   : > { %569 = vst [vmem:[#allocation3 + $0x8] sm:$0xff] %v567_v44 }
 0x2a0   : > { %v574_v45 = vld [vmem:[#allocation3] sm:$0xff]  ;;  %v930_v47 = vld [vmem:[%s311_s8] ss:$0 sm:$0xff] }
 0x2a1   : > { %v580_v48 = vadd.f32 %v930_v47, %v574_v45 }
 0x2a3   : > { %585 = sbr.rel (%p828_p0) target bundleno = 684 (0x2ac), region = 64 }
 0x2a6   : > { %v575_v46 = vld [vmem:[#allocation3 + $0x8] sm:$0xff] }
 0x2a7   : > { %v581_v49 = vadd.f32 %v930_v47, %v575_v46 }
 0x2a8   : > { %v586_v50 = vmax.f32 %v580_v48, 0.0 }
 0x2a9   : > { %v587_v51 = vmax.f32 %v581_v49, 0.0 }
 0x2aa   : > { %588 = vst [vmem:[#allocation4 + $0x8] sm:$0xff] %v586_v50 }
 0x2ab   : > { %589 = vst [vmem:[#allocation4] sm:$0xff] %v587_v51 }
 0x2ac PF: > { %p829_p1 = scmp.ne.s32.totalorder %s1031_s19, 1 }
 0x2ae   : > { %593 = sbr.rel (%p829_p1) target bundleno = 960 (0x3c0), region = 68 }
 0x2b3   : > { %v594_v52 = vlaneseq }
 0x2b5   : > { %v595_v53 = vand.u32 127, %v594_v52 }
 0x2b7   : > { %vm596_vm1 = vcmp.lt.s32.totalorder %v595_v53, 4 }
 0x2b8   : > { %v597_v54 = vsel %vm596_vm1, %v580_v48, -inf  ;;  %v598_v55 = vsel %vm596_vm1, %v581_v49, -inf }
 0x2b9   : > { %599 = vmax.xlane.f32.xlu0 %v597_v54 }
 0x2c1   : > { %601 = vmax.xlane.f32.xlu0 %v598_v55 }
 0x32c   : > { %v600_v56 = vpop.xlane.xlu0 %599 }
 0x32d   : > { %v603_v57 = vsub.f32 %v597_v54, %v600_v56 }
 0x32f   : > { %v605_v58 = vmul.f32 1.442695, %v603_v57 }
 0x331   : > { %931 = vpow2.f32 %v605_v58 }
 0x334   : > { %v602_v59 = vpop.xlane.xlu0 %601 }
 0x335   : > { %v604_v60 = vsub.f32 %v598_v55, %v602_v59 }
 0x337   : > { %v932_v61 = vpop.eup %931  ;;  %v607_v62 = vmul.f32 1.442695, %v604_v60 }
 0x338   : > { %609 = vadd.xlane.f32.xlu1 %v932_v61 }
 0x339   : > { %933 = vpow2.f32 %v607_v62 }
 0x33f   : > { %v934_v63 = vpop.eup %933 }
 0x340   : > { %611 = vadd.xlane.f32.xlu1 %v934_v63 }
 0x3ab   : > { %v610_v0 = vpop.xlane.xlu1 %609 }
 0x3ac   : > { %935 = vlog2.f32 %v610_v0 }
 0x3b2   : > { %v936_v1 = vpop.eup %935 }
 0x3b3   : > { %v614_v2 = vmul.f32 0.6931472, %v936_v1  ;;  %v612_v3 = vpop.xlane.xlu1 %611 }
 0x3b4   : > { %937 = vlog2.f32 %v612_v3 }
 0x3b5   : > { %v617_v4 = vsub.f32 %v603_v57, %v614_v2 }
 0x3b7   : > { %619 = vst [vmem:[#allocation8] sm:$0xff] %v617_v4 }
 0x3ba   : > { %v938_v5 = vpop.eup %937 }
 0x3bb   : > { %v616_v6 = vmul.f32 0.6931472, %v938_v5 }
 0x3bd   : > { %v618_v7 = vsub.f32 %v604_v60, %v616_v6 }
 0x3bf   : > { %620 = vst [vmem:[#allocation8 + $0x8] sm:$0xff] %v618_v7 }
 0x3c0 PF: > { %s1228_s18 = sadd.s32 4294967295, %s1043_s22   ;;  %s628_s11 = sshll.u32 %s1222_s5, 4  ;;  %s629_s11 = int_to_ptr.hbm [resolvable:$true] %s628_s11 }
 0x3c1   : > { %p879_p2 = scmp.eq.s32.totalorder %s1228_s18, 5  ;;  %s1050_s12 = smov [#allocation8]  }
 0x3c2   : > { %s626_s13 = sshll.u32 %s1050_s12, 4  ;;  %s1051_s14 = smov 128   ;;  %s627_s13 = int_to_ptr.vmem [resolvable:$true] %s626_s13 }
 0x3c3   : > { %s1052_s15 = smov 8  }
 0x3c4   : > { %870 = dma.vmem_to_hbm [thread:$0]  (%p879_p2), %s627_s13, 256, %s629_s11, [#allocation7], %s1051_s14, %s1051_s14, %s1052_s15  }
 0x3c5   : > { %1022 = dma.done.wait (%p879_p2), [#allocation7], 256  }
 0x3c6   : > { %1024 = vsyncadd (%p879_p2), [#allocation7], 4294967040 }
 0x3c7 PF: > { %s17_s22 = sadd.s32 1, %s1043_s22   ;;  %s1229_s18 = smov %s1035_s20 }
 0x3c8   : > { %p14_p3 = scmp.ge.s32.totalorder %s17_s22, 8   ;;  %s1230_s19 = smov %s1039_s21 }
 0x3c9   : > { %s1231_s20 = smov %s1234_s24  ;;  %s1232_s21 = smov %s1238_s25 }
 0x3ca   :  { %16 = sbr.rel (!%p14_p3) target bundleno = 6 (0x6), region = 105 }
 0x3cf   :  { %645 = vsyncpa [#allocation6], 1 }
 0x3d0   :  { %647 = vsyncpa [#allocation6 + $0x1], 1 }
 0x3d1   :  { %648 = vsyncpa [#allocation7], 1 }
 0x3d2   :  { %650 = vsyncpa [#allocation7 + $0x1], 1 }

</bundles_post_ra>
